<compile_context>
chip_gen: v5e
topology: v5e:2x2
jax: 0.10.0
libtpu: 0.0.40
codegen_flags: <defaults>
</compile_context>

<pallas_src>
import numpy as np

import jax
import jax.numpy as jnp
from jax.experimental import pallas as pl
from jax.experimental.pallas import tpu as pltpu


def _pool_geometry(H, W, ratio, over_lap):
    """Replicates the Python-int rounding of the PyTorch module exactly."""
    kh = int(H / ratio + 0.5)
    kw = int(W / ratio + 0.5)
    if over_lap:
        sh = int(kh / 2 + 0.5)
        sw = int(kw / 2 + 0.5)
    else:
        sh, sw = kh, kw
    ph = int((sh - (H - kh) % sh) % sh / 2 + 0.5)
    pw = int((sw - (W - kw) % sw) % sw / 2 + 0.5)
    return kh, kw, sh, sw, ph, pw


def _pooling_matrix(H, W, kh, kw, sh, sw, ph, pw, OH, OW):
    """(H*W, OH*OW) matrix P with P[h*W+w, oh*OW+ow] = 1/(kh*kw) iff (h, w)
    lies inside window (oh, ow) clipped to the valid image, else 0.

    avgpool(x)[c, oh, ow] == x[c].reshape(H*W) @ P[:, oh*OW+ow], exactly
    matching F.avg_pool2d(..., count_include_pad=True).
    """
    P = np.zeros((H * W, OH * OW), dtype=np.float32)
    inv = 1.0 / float(kh * kw)
    for oh in range(OH):
        h0 = oh * sh - ph
        for ow in range(OW):
            w0 = ow * sw - pw
            for h in range(max(h0, 0), min(h0 + kh, H)):
                for w in range(max(w0, 0), min(w0 + kw, W)):
                    P[h * W + w, oh * OW + ow] = inv
    return jnp.asarray(P)


def _lap_kernel(x_ref, p_ref, o_ref):
    """Pool one (tb, H*W) channel block into (tb, OH*OW): one MXU contraction,
    one dense lane-major store."""
    o_ref[...] = jnp.dot(
        x_ref[...].astype(jnp.float32),
        p_ref[...],
        precision=jax.lax.Precision.HIGHEST,   # exact f32 passes on the MXU
        preferred_element_type=jnp.float32,
    ).astype(o_ref.dtype)


def _round_up(a, b):
    return ((a + b - 1) // b) * b


def local_average_pooling(x, ratio, over_lap=True):
    """JAX/Pallas equivalent of LocalAveragePooling.forward (NCHW in/out)."""
    B, C, H, W = x.shape
    kh, kw, sh, sw, ph, pw = _pool_geometry(H, W, ratio, over_lap)

    # Sanity checks mirroring F.avg_pool2d's constraints.
    assert kh >= 1 and kw >= 1 and sh >= 1 and sw >= 1, (kh, kw, sh, sw)
    assert 2 * ph <= kh and 2 * pw <= kw, (ph, pw, kh, kw)

    OH = (H + 2 * ph - kh) // sh + 1            # ceil_mode=False
    OW = (W + 2 * pw - kw) // sw + 1
    assert OH >= 1 and OW >= 1, (OH, OW)

    BC, HW, N = B * C, H * W, OH * OW
    itemsize = jnp.dtype(x.dtype).itemsize

    x2 = x.reshape(BC, HW)                      # free (contiguous) reshape
    pool_mat = _pooling_matrix(H, W, kh, kw, sh, sw, ph, pw, OH, OW)

    # Channel tile: ~1 MiB of input block (mem-bound plateau), a multiple of 8
    # sublanes, and small enough that the grid has >= ~8 steps whenever BC
    # allows it (pipeline overlap; v7x megacore sharding on the parallel axis).
    if BC <= 8:
        tb = BC
    else:
        target_bytes = 1 << 20
        tb_cap = max(8, ((target_bytes // max(1, HW * itemsize)) // 8) * 8)
        tb_for_8_steps = _round_up(max(1, -(-BC // 8)), 8)
        tb = min(tb_cap, tb_for_8_steps, _round_up(BC, 8))
    grid = (pl.cdiv(BC, tb),)

    # VMEM budget from the actual tile-padded block bytes (+50% headroom).
    tb_p, hw_p, n_p = _round_up(tb, 8), _round_up(HW, 128), _round_up(N, 128)
    block_bytes = (2 * tb_p * hw_p * itemsize   # double-buffered input block
                   + tb_p * hw_p * 4            # f32 working copy (bf16 inputs)
                   + 2 * hw_p * n_p * 4         # resident pooling matrix
                   + 2 * tb_p * n_p * 4)        # double-buffered output block
    vmem_limit = min(96 << 20, max(4 << 20, int(block_bytes * 1.5)))

    out2 = pl.pallas_call(
        _lap_kernel,
        out_shape=jax.ShapeDtypeStruct((BC, N), x.dtype),
        grid=grid,
        in_specs=[
            pl.BlockSpec((tb, HW), lambda i: (i, 0)),
            pl.BlockSpec((HW, N), lambda i: (0, 0)),   # constant index -> resident
        ],
        out_specs=pl.BlockSpec((tb, N), lambda i: (i, 0)),
        compiler_params=pltpu.CompilerParams(
            dimension_semantics=("parallel",),
            vmem_limit_bytes=vmem_limit),
    )(x2, pool_mat)

    return out2.reshape(B, C, OH, OW)           # free reshape back to NCHW


def _reference(x, ratio, over_lap=True):
    """Pure-JAX reference matching F.avg_pool2d(count_include_pad=True)."""
    H, W = x.shape[2], x.shape[3]
    kh, kw, sh, sw, ph, pw = _pool_geometry(H, W, ratio, over_lap)
    xp = jnp.pad(x.astype(jnp.float32), ((0, 0), (0, 0), (ph, ph), (pw, pw)))
    s = jax.lax.reduce_window(
        xp, 0.0, jax.lax.add,
        window_dimensions=(1, 1, kh, kw),
        window_strides=(1, 1, sh, sw),
        padding='VALID')
    return s / float(kh * kw)


def _check(x, ratio, over_lap):
    out = jax.block_until_ready(local_average_pooling(x, ratio, over_lap=over_lap))
    ref = _reference(x, ratio, over_lap=over_lap)
    assert out.shape == ref.shape, (out.shape, ref.shape)
    out32 = out.astype(jnp.float32)
    err = float(jnp.max(jnp.abs(out32 - ref)))
    assert jnp.allclose(out32, ref, rtol=1e-5, atol=1e-5), err


if __name__ == "__main__":
    key = jax.random.PRNGKey(0)

    # CdCL defaults: lap_ratio=3, over_lap=True; small backbone feature map.
    x = jax.random.normal(key, (2, 4, 16, 16), dtype=jnp.float32)
    _check(x, ratio=3, over_lap=True)

    # Non-overlapping variant of the same module.
    _check(x, ratio=3, over_lap=False)

    # B*C not a multiple of the channel tile -> exercises the masked last block.
    x2 = jax.random.normal(jax.random.PRNGKey(0), (3, 40, 16, 16), dtype=jnp.float32)
    _check(x2, ratio=3, over_lap=True)

    print("KERNEL_OK")
</pallas_src>

<mosaic_0001>
module attributes {stable_mosaic.version = 11 : i64} {
  func.func @_lap_kernel(%arg0: i32, %arg1: memref<8x256xf32, #tpu.memory_space<vmem>>, %arg2: memref<256x25xf32, #tpu.memory_space<vmem>>, %arg3: memref<8x25xf32, #tpu.memory_space<vmem>>) attributes {dimension_semantics = [#tpu.dimension_semantics<parallel>], iteration_bounds = array<i64: 1>, scalar_prefetch = 0 : i64, scratch_operands = 0 : i64, tpu.core_type = #tpu.core_type<tc>, window_params = [{transform_indices = @transform_0, window_bounds = array<i64: 8, 256>}, {pipeline_mode = #tpu.pipeline_mode<synchronous>, transform_indices = @transform_1, window_bounds = array<i64: 256, 25>}, {transform_indices = @transform_2, window_bounds = array<i64: 8, 25>}]} {
    %c0 = arith.constant 0 : index
    %c0_0 = arith.constant 0 : index
    %0 = vector.load %arg1[%c0, %c0_0] : memref<8x256xf32, #tpu.memory_space<vmem>>, vector<8x256xf32>
    %c0_1 = arith.constant 0 : index
    %c0_2 = arith.constant 0 : index
    %1 = vector.load %arg2[%c0_1, %c0_2] : memref<256x25xf32, #tpu.memory_space<vmem>>, vector<256x25xf32>
    %cst = arith.constant dense<0.000000e+00> : vector<8x25xf32>
    %2 = tpu.matmul %0, %1, %cst {dimension_numbers = #tpu.dot_dimension_numbers<[1], [0], [0], [1], [0, 0, 1, 1], [], []>, precision = #tpu.contract_precision<fp32>} : vector<8x256xf32>, vector<256x25xf32>, vector<8x25xf32> -> vector<8x25xf32>
    %c0_3 = arith.constant 0 : index
    %c0_4 = arith.constant 0 : index
    %3 = vector.load %arg3[%c0_3, %c0_4] : memref<8x25xf32, #tpu.memory_space<vmem>>, vector<8x25xf32>
    tpu.vector_store %arg3[%c0_3, %c0_4], %2 {strides = array<i32>} : memref<8x25xf32, #tpu.memory_space<vmem>>, vector<8x25xf32>,
    return
  }
  func.func @transform_0(%arg0: i32) -> (i32, i32) {
    %c0_i32 = arith.constant 0 : i32
    %c0_i32_0 = arith.constant 0 : i32
    return %arg0, %c0_i32 : i32, i32
  }
  func.func @transform_1(%arg0: i32) -> (i32, i32) {
    %c0_i32 = arith.constant 0 : i32
    %c0_i32_0 = arith.constant 0 : i32
    %c0_i32_1 = arith.constant 0 : i32
    return %c0_i32, %c0_i32_0 : i32, i32
  }
  func.func @transform_2(%arg0: i32) -> (i32, i32) {
    %c0_i32 = arith.constant 0 : i32
    %c0_i32_0 = arith.constant 0 : i32
    return %arg0, %c0_i32 : i32, i32
  }
}

</mosaic_0001>

<bundles_post_ra>
// kernel: tpu_custom_call.1
= control target key start
LH: loop header
LB: loop body
LE: loop exit
PB: predicated region body
PF: predicated region fallthrough
CT: control target
= control target key end

     0   :  { %s1400_s0 = inlined_call_operand.vmem [shape: f32[8,256], index: 0, kind: input, shape index: {}]   ;;  %s1401_s1 = inlined_call_operand.vmem [shape: f32[256,25], index: 1, kind: input, shape index: {}]   ;;  %s1402_s2 = inlined_call_operand.hbm [shape: f32[8,25], index: 2, kind: output, shape index: {}]  }
   0x1   :  { %v29_v0 = vld [vmem:[%s1401_s1 + $0x78] sm:$0xff]  ;;  %v28_v1 = vld [vmem:[%s1401_s1 + $0x70] sm:$0xff]  ;;  %v27_v2 = vld [vmem:[%s1401_s1 + $0x68] sm:$0xff] }
   0x2   :  { %v798_v3 = vand.u32 4294901760, %v29_v0  ;;  %v800_v4 = vand.u32 4294901760, %v28_v1  ;;  %v802_v5 = vand.u32 4294901760, %v27_v2  ;;  %v26_v6 = vld [vmem:[%s1401_s1 + $0x60] sm:$0xff]  ;;  %v25_v7 = vld [vmem:[%s1401_s1 + $0x58] sm:$0xff]  ;;  %v24_v8 = vld [vmem:[%s1401_s1 + $0x50] sm:$0xff] }
   0x3   :  { %v813_v9 = vand.u32 4294901760, %v26_v6  ;;  %v815_v10 = vand.u32 4294901760, %v25_v7  ;;  %v817_v11 = vand.u32 4294901760, %v24_v8  ;;  %v23_v12 = vld [vmem:[%s1401_s1 + $0x48] sm:$0xff]  ;;  %v22_v13 = vld [vmem:[%s1401_s1 + $0x40] sm:$0xff]  ;;  %v21_v18 = vld [vmem:[%s1401_s1 + $0x38] sm:$0xff] }
   0x4   :  { %47 = vmatpush.msra.mxu0 %v798_v3  ;;  %v827_v14 = vsub.f32 %v29_v0, %v798_v3  ;;  %v830_v15 = vsub.f32 %v28_v1, %v800_v4  ;;  %243 = vmatpush.msra.mxu3 %v798_v3  ;;  %v834_v16 = vsub.f32 %v27_v2, %v802_v5  ;;  %v836_v17 = vand.u32 4294901760, %v23_v12  ;;  %v20_v26 = vld [vmem:[%s1401_s1 + $0x30] sm:$0xff]  ;;  %v19_v34 = vld [vmem:[%s1401_s1 + $0x28] sm:$0xff] }
   0x5   :  { %v842_v19 = vsub.f32 %v26_v6, %v813_v9  ;;  %v845_v20 = vsub.f32 %v25_v7, %v815_v10  ;;  %v848_v21 = vsub.f32 %v24_v8, %v817_v11  ;;  %v855_v25 = vand.u32 4294901760, %v22_v13 }
   0x6   :  { %49 = vmatpush.msra.mxu0 %v800_v4  ;;  %190 = vmatpush.msra.mxu2 %v827_v14  ;;  %v89_v22 = vand.u32 4294901760, %v827_v14  ;;  %v1418_v23 = vand.u32 4294901760, %v830_v15  ;;  %v1416_v24 = vand.u32 4294901760, %v834_v16  ;;  %v862_v28 = vand.u32 4294901760, %v21_v18 }
   0x7   :  { %245 = vmatpush.msra.mxu3 %v800_v4  ;;  %v1414_v27 = vand.u32 4294901760, %v842_v19  ;;  %v865_v29 = vsub.f32 %v23_v12, %v836_v17  ;;  %v1412_v33 = vand.u32 4294901760, %v845_v20 }
   0x8   :  { %51 = vmatpush.msra.mxu0 %v802_v5  ;;  %193 = vmatpush.msra.mxu2 %v830_v15  ;;  %v90_v30 = vsub.f32 %v827_v14, %v89_v22  ;;  %v96_v31 = vsub.f32 %v830_v15, %v1418_v23  ;;  %v102_v32 = vsub.f32 %v834_v16, %v1416_v24 }
   0x9   :  { %7 = vsyncpa [#allocation3], 0  ;;  %247 = vmatpush.msra.mxu3 %v802_v5  ;;  %v883_v35 = vand.u32 4294901760, %v20_v26  ;;  %v1411_v36 = vand.u32 4294901760, %v848_v21  ;;  %v108_v39 = vsub.f32 %v842_v19, %v1414_v27  ;;  %v892_v40 = vsub.f32 %v22_v13, %v855_v25  ;;  %v18_v42 = vld [vmem:[%s1401_s1 + $0x20] sm:$0xff]  ;;  %v17_v48 = vld [vmem:[%s1401_s1 + $0x18] sm:$0xff] }
   0xa   :  { %53 = vmatpush.msra.mxu0 %v813_v9  ;;  %v91_v37 = vand.u32 4294901760, %v90_v30  ;;  %196 = vmatpush.msra.mxu2 %v834_v16  ;;  %v97_v38 = vand.u32 4294901760, %v96_v31  ;;  %v895_v41 = vand.u32 4294901760, %v19_v34  ;;  %v103_v43 = vand.u32 4294901760, %v102_v32  ;;  %v16_v54 = vld [vmem:[%s1401_s1 + $0x10] sm:$0xff]  ;;  %v45_v59 = vld [vmem:[%s1401_s1 + $0xf8] sm:$0xff] }
   0xb   :  { %249 = vmatpush.msra.mxu3 %v813_v9  ;;  %v114_v44 = vsub.f32 %v845_v20, %v1412_v33  ;;  %v1409_v45 = vand.u32 4294901760, %v865_v29  ;;  %v906_v46 = vsub.f32 %v21_v18, %v862_v28  ;;  %v120_v47 = vsub.f32 %v848_v21, %v1411_v36  ;;  %v15_v61 = vld [vmem:[%s1401_s1 + $0x8] sm:$0xff]  ;;  %v14_v2 = vld [vmem:[%s1401_s1] sm:$0xff]  ;;  %v44_v6 = vld [vmem:[%s1401_s1 + $0xf0] sm:$0xff]  ;;  %s737_s23 = sshll.u32 %s1402_s2, 4  ;;  %s738_s23 = int_to_ptr.hbm [resolvable:$true] %s737_s23 }
   0xc   :  { %55 = vmatpush.msra.mxu0 %v815_v10  ;;  %92 = vmatpush.msra.mxu1 %v91_v37  ;;  %v109_v49 = vand.u32 4294901760, %v108_v39  ;;  %v917_v50 = vand.u32 4294901760, %v18_v42  ;;  %v1408_v51 = vand.u32 4294901760, %v892_v40  ;;  %v921_v52 = vsub.f32 %v20_v26, %v883_v35  ;;  %v43_v32 = vld [vmem:[%s1401_s1 + $0xe8] sm:$0xff] }
   0xd   :  { %199 = vmatpush.msra.mxu2 %v842_v19  ;;  %251 = vmatpush.msra.mxu3 %v815_v10  ;;  %v926_v53 = vsub.f32 %v19_v34, %v895_v41  ;;  %v115_v55 = vand.u32 4294901760, %v114_v44  ;;  %v126_v56 = vsub.f32 %v865_v29, %v1409_v45  ;;  %v935_v57 = vand.u32 4294901760, %v17_v48  ;;  %v42_v44 = vld [vmem:[%s1401_s1 + $0xe0] sm:$0xff] }
   0xe   :  { %57 = vmatpush.msra.mxu0 %v817_v11  ;;  %98 = vmatpush.msra.mxu1 %v97_v38  ;;  %v1407_v58 = vand.u32 4294901760, %v906_v46  ;;  %v121_v60 = vand.u32 4294901760, %v120_v47  ;;  %v132_v62 = vsub.f32 %v892_v40, %v1408_v51  ;;  %v950_v63 = vand.u32 4294901760, %v16_v54  ;;  %v38_v45 = vld [vmem:[%s1401_s1 + $0xc0] sm:$0xff] }
   0xf   :  { %202 = vmatpush.msra.mxu2 %v845_v20  ;;  %253 = vmatpush.msra.mxu3 %v817_v11  ;;  %v1405_v0 = vand.u32 4294901760, %v921_v52  ;;  %v954_v1 = vsub.f32 %v18_v42, %v917_v50  ;;  %v1404_v7 = vand.u32 4294901760, %v926_v53  ;;  %v965_v8 = vand.u32 4294901760, %v45_v59 }
  0x10   :  { %59 = vmatpush.msra.mxu0 %v836_v17  ;;  %104 = vmatpush.msra.mxu1 %v103_v43  ;;  %v127_v12 = vand.u32 4294901760, %v126_v56  ;;  %v138_v13 = vsub.f32 %v906_v46, %v1407_v58  ;;  %v971_v18 = vand.u32 4294901760, %v15_v61  ;;  %v974_v26 = vsub.f32 %v17_v48, %v935_v57 }
  0x11   :  { %205 = vmatpush.msra.mxu2 %v848_v21  ;;  %255 = vmatpush.msra.mxu3 %v836_v17  ;;  %v978_v30 = vand.u32 4294901760, %v14_v2  ;;  %v980_v31 = vand.u32 4294901760, %v44_v6  ;;  %v133_v34 = vand.u32 4294901760, %v132_v62  ;;  %v144_v37 = vsub.f32 %v921_v52, %v1405_v0 }
  0x12   :  { %61 = vmatpush.msra.mxu0 %v855_v25  ;;  %110 = vmatpush.msra.mxu1 %v109_v49  ;;  %v1403_v38 = vand.u32 4294901760, %v954_v1  ;;  %v991_v39 = vsub.f32 %v16_v54, %v950_v63  ;;  %v150_v42 = vsub.f32 %v926_v53, %v1404_v7  ;;  %v999_v43 = vsub.f32 %v45_v59, %v965_v8  ;;  %v41_v59 = vld [vmem:[%s1401_s1 + $0xd8] sm:$0xff]  ;;  %v39_v7 = vld [vmem:[%s1401_s1 + $0xc8] sm:$0xff] }
  0x13   :  { %208 = vmatpush.msra.mxu2 %v865_v29  ;;  %257 = vmatpush.msra.mxu3 %v855_v25  ;;  %v139_v47 = vand.u32 4294901760, %v138_v13  ;;  %v1406_v48 = vand.u32 4294901760, %v974_v26  ;;  %v1007_v49 = vsub.f32 %v15_v61, %v971_v18  ;;  %v1009_v54 = vand.u32 4294901760, %v43_v32  ;;  %v40_v13 = vld [vmem:[%s1401_s1 + $0xd0] sm:$0xff] }
  0x14   :  { %63 = vmatpush.msra.mxu0 %v862_v28  ;;  %116 = vmatpush.msra.mxu1 %v115_v55  ;;  %v1014_v55 = vsub.f32 %v14_v2, %v978_v30  ;;  %v1017_v56 = vsub.f32 %v44_v6, %v980_v31  ;;  %v156_v61 = vsub.f32 %v954_v1, %v1403_v38  ;;  %v1410_v62 = vand.u32 4294901760, %v991_v39 }
  0x15   :  { %211 = vmatpush.msra.mxu2 %v892_v40  ;;  %259 = vmatpush.msra.mxu3 %v862_v28  ;;  %v151_v2 = vand.u32 4294901760, %v150_v42  ;;  %v1413_v6 = vand.u32 4294901760, %v999_v43  ;;  %v1041_v38 = vsub.f32 %v43_v32, %v1009_v54  ;;  %v1043_v42 = vand.u32 4294901760, %v41_v59 }
  0x16   :  { %65 = vmatpush.msra.mxu0 %v883_v35  ;;  %122 = vmatpush.msra.mxu1 %v121_v60  ;;  %v145_v60 = vand.u32 4294901760, %v144_v37  ;;  %v1415_v37 = vand.u32 4294901760, %v1007_v49  ;;  %v1417_v0 = vand.u32 4294901760, %v1017_v56  ;;  %v168_v32 = vsub.f32 %v991_v39, %v1410_v62 }
  0x17   :  { %214 = vmatpush.msra.mxu2 %v906_v46  ;;  %261 = vmatpush.msra.mxu3 %v883_v35  ;;  %v1059_v51 = vand.u32 4294901760, %v40_v13  ;;  %v1420_v36 = vand.u32 4294901760, %v1041_v38  ;;  %v1077_v33 = vsub.f32 %v41_v59, %v1043_v42  ;;  %v1084_v27 = vand.u32 4294901760, %v38_v45 }
  0x18   :  { %67 = vmatpush.msra.mxu0 %v895_v41  ;;  %128 = vmatpush.msra.mxu1 %v127_v12  ;;  %v1027_v12 = vand.u32 4294901760, %v42_v44  ;;  %v174_v62 = vsub.f32 %v1007_v49, %v1415_v37  ;;  %vm728_vm0 = vcmask 203776  }
  0x19   :  { %217 = vmatpush.msra.mxu2 %v921_v52  ;;  %263 = vmatpush.msra.mxu3 %v895_v41  ;;  %v1095_v24 = vsub.f32 %v40_v13, %v1059_v51  ;;  %v443_v13 = vsub.f32 %v1041_v38, %v1420_v36  ;;  %v1422_v14 = vand.u32 4294901760, %v1077_v33 }
  0x1a   :  { %69 = vmatpush.msra.mxu0 %v917_v50  ;;  %134 = vmatpush.msra.mxu1 %v133_v34  ;;  %v162_v34 = vsub.f32 %v974_v26, %v1406_v48  ;;  %v157_v48 = vand.u32 4294901760, %v156_v61  ;;  %v1057_v58 = vsub.f32 %v42_v44, %v1027_v12  ;;  %v1069_v61 = vand.u32 4294901760, %v39_v7 }
  0x1b   :  { %220 = vmatpush.msra.mxu2 %v926_v53  ;;  %265 = vmatpush.msra.mxu3 %v917_v50 }
  0x1c   :  { %71 = vmatpush.msra.mxu0 %v935_v57  ;;  %140 = vmatpush.msra.mxu1 %v139_v47  ;;  %v1419_v47 = vand.u32 4294901760, %v1014_v55  ;;  %v163_v44 = vand.u32 4294901760, %v162_v34  ;;  %v169_v34 = vand.u32 4294901760, %v168_v32  ;;  %v1421_v37 = vand.u32 4294901760, %v1057_v58 }
  0x1d   :  { %223 = vmatpush.msra.mxu2 %v954_v1  ;;  %267 = vmatpush.msra.mxu3 %v935_v57  ;;  %v1101_v23 = vsub.f32 %v39_v7, %v1069_v61  ;;  %v175_v32 = vand.u32 4294901760, %v174_v62  ;;  %v35_v62 = vld [vmem:[%s1401_s1 + $0xa8] sm:$0xff] }
  0x1e   :  { %73 = vmatpush.msra.mxu0 %v950_v63  ;;  %146 = vmatpush.msra.mxu1 %v145_v60  ;;  %v431_v60 = vsub.f32 %v999_v43, %v1413_v6  ;;  %v437_v6 = vsub.f32 %v1017_v56, %v1417_v0  ;;  %v180_v59 = vsub.f32 %v1014_v55, %v1419_v47 }
  0x1f   :  { %226 = vmatpush.msra.mxu2 %v974_v26  ;;  %269 = vmatpush.msra.mxu3 %v950_v63  ;;  %v1117_v47 = vsub.f32 %v38_v45, %v1084_v27  ;;  %v449_v36 = vsub.f32 %v1057_v58, %v1421_v37  ;;  %v455_v37 = vsub.f32 %v1077_v33, %v1422_v14  ;;  %v1426_v14 = vand.u32 4294901760, %v1095_v24 }
  0x20   :  { %75 = vmatpush.msra.mxu0 %v971_v18  ;;  %152 = vmatpush.msra.mxu1 %v151_v2  ;;  %v37_v2 = vld [vmem:[%s1401_s1 + $0xb8] sm:$0xff]  ;;  %v432_v0 = vand.u32 4294901760, %v431_v60  ;;  %v1423_v60 = vand.u32 4294901760, %v830_v15  ;;  %v438_v7 = vand.u32 4294901760, %v437_v6  ;;  %v1424_v6 = vand.u32 4294901760, %v834_v16 }
  0x21   :  { %229 = vmatpush.msra.mxu2 %v991_v39  ;;  %271 = vmatpush.msra.mxu3 %v971_v18  ;;  %v1142_v16 = vand.u32 4294901760, %v35_v62 }
  0x22   :  { %77 = vmatpush.msra.mxu0 %v978_v30  ;;  %158 = vmatpush.msra.mxu1 %v157_v48  ;;  %v36_v48 = vld [vmem:[%s1401_s1 + $0xb0] sm:$0xff] }
  0x23   :  { %232 = vmatpush.msra.mxu2 %v1007_v49  ;;  %273 = vmatpush.msra.mxu3 %v978_v30 }
  0x24   :  { %284 = vmatpush.msrb.mxu0 %v89_v22  ;;  %164 = vmatpush.msra.mxu1 %v163_v44  ;;  %v1111_v22 = vand.u32 4294901760, %v37_v2  ;;  %v181_v44 = vand.u32 4294901760, %v180_v59  ;;  %v444_v59 = vand.u32 4294901760, %v443_v13  ;;  %v450_v13 = vand.u32 4294901760, %v449_v36  ;;  %v12_v36 = vld [vmem:[%s1400_s0] sm:$0xff] }
  0x25   :  { %235 = vmatpush.msra.mxu2 %v1014_v55  ;;  %433 = vmatpush.msrb.mxu3 %v432_v0  ;;  %v1425_v0 = vand.u32 4294901760, %v842_v19 }
  0x26   :  { %288 = vmatpush.msrb.mxu0 %v1423_v60  ;;  %170 = vmatpush.msra.mxu1 %v169_v34  ;;  %v1127_v60 = vand.u32 4294901760, %v36_v48  ;;  %v34_v34 = vld [vmem:[%s1401_s1 + $0xa0] sm:$0xff]  ;;  %v1140_v15 = vsub.f32 %v37_v2, %v1111_v22  ;;  %v461_v2 = vsub.f32 %v1095_v24, %v1426_v14 }
  0x27   :  { %388 = vmatpush.msrb.mxu2 %v965_v8  ;;  %439 = vmatpush.msrb.mxu3 %v438_v7  ;;  %v1157_v19 = vand.u32 4294901760, %v34_v34  ;;  %v1427_v7 = vand.u32 4294901760, %v845_v20 }
  0x28   :  { %292 = vmatpush.msrb.mxu0 %v1424_v6  ;;  %176 = vmatpush.msra.mxu1 %v175_v32  ;;  %v33_v32 = vld [vmem:[%s1401_s1 + $0x98] sm:$0xff]  ;;  %v1155_v45 = vsub.f32 %v36_v48, %v1127_v60  ;;  %v456_v48 = vand.u32 4294901760, %v455_v37  ;;  %v1171_v6 = vsub.f32 %v35_v62, %v1142_v16  ;;  %v32_v37 = vld [vmem:[%s1401_s1 + $0x90] sm:$0xff]  ;;  %v462_v62 = vand.u32 4294901760, %v461_v2 }
  0x29   :  { %390 = vmatpush.msrb.mxu2 %v980_v31  ;;  %445 = vmatpush.msrb.mxu3 %v444_v59  ;;  %v1173_v20 = vand.u32 4294901760, %v33_v32  ;;  %v1187_v14 = vsub.f32 %v34_v34, %v1157_v19  ;;  %v1202_v59 = vand.u32 4294901760, %v32_v37 }
  0x2a   :  { %296 = vmatpush.msrb.mxu0 %v1425_v0  ;;  %182 = vmatpush.msra.mxu1 %v181_v44  ;;  %v1428_v0 = vand.u32 4294901760, %v1101_v23 }
  0x2b   :  { %392 = vmatpush.msrb.mxu2 %v1009_v54  ;;  %451 = vmatpush.msrb.mxu3 %v450_v13  ;;  %v1432_v13 = vand.u32 4294901760, %v1140_v15 }
  0x2c   :  { %300 = vmatpush.msrb.mxu0 %v1427_v7  ;;  %351 = vmatpush.msrb.mxu1 %v798_v3  ;;  %v467_v44 = vsub.f32 %v1101_v23, %v1428_v0  ;;  %v1429_v3 = vand.u32 4294901760, %v848_v21  ;;  %v1430_v7 = vand.u32 4294901760, %v1117_v47  ;;  %v1189_v21 = vand.u32 4294901760, %v12_v36 }
  0x2d   :  { %394 = vmatpush.msrb.mxu2 %v1027_v12  ;;  %457 = vmatpush.msrb.mxu3 %v456_v48  ;;  %v479_v34 = vsub.f32 %v1140_v15, %v1432_v13  ;;  %v1434_v48 = vand.u32 4294901760, %v1155_v45  ;;  %v1437_v13 = vand.u32 4294901760, %v921_v52  ;;  %v1439_v52 = vand.u32 4294901760, %v926_v53 }
  0x2e   :  { %304 = vmatpush.msrb.mxu0 %v1429_v3  ;;  %353 = vmatpush.msrb.mxu1 %v800_v4  ;;  %v473_v0 = vsub.f32 %v1117_v47, %v1430_v7  ;;  %v1431_v4 = vand.u32 4294901760, %v865_v29  ;;  %v468_v3 = vand.u32 4294901760, %v467_v44  ;;  %v31_v7 = vld [vmem:[%s1401_s1 + $0x88] sm:$0xff]  ;;  %v1205_v29 = vsub.f32 %v33_v32, %v1173_v20 }
  0x2f   :  { %396 = vmatpush.msrb.mxu2 %v1043_v42  ;;  %463 = vmatpush.msrb.mxu3 %v462_v62  ;;  %v1216_v2 = vsub.f32 %v12_v36, %v1189_v21  ;;  %v1218_v32 = vand.u32 4294901760, %v31_v7  ;;  %v1436_v62 = vand.u32 4294901760, %v1171_v6 }
  0x30   :  { %308 = vmatpush.msrb.mxu0 %v1431_v4  ;;  %355 = vmatpush.msrb.mxu1 %v802_v5  ;;  %v1433_v5 = vand.u32 4294901760, %v892_v40  ;;  %v474_v44 = vand.u32 4294901760, %v473_v0  ;;  %v485_v4 = vsub.f32 %v1155_v45, %v1434_v48  ;;  %v30_v40 = vld [vmem:[%s1401_s1 + $0x80] sm:$0xff]  ;;  %v480_v0 = vand.u32 4294901760, %v479_v34 }
  0x31   :  { %398 = vmatpush.msrb.mxu2 %v1059_v51  ;;  %469 = vmatpush.msrb.mxu3 %v468_v3  ;;  %v491_v36 = vsub.f32 %v1171_v6, %v1436_v62  ;;  %v1232_v48 = vsub.f32 %v32_v37, %v1202_v59  ;;  %v1438_v3 = vand.u32 4294901760, %v1187_v14  ;;  %v1245_v37 = vsub.f32 %v31_v7, %v1218_v32 }
  0x32   :  { %312 = vmatpush.msrb.mxu0 %v1433_v5  ;;  %357 = vmatpush.msrb.mxu1 %v813_v9  ;;  %v1435_v9 = vand.u32 4294901760, %v906_v46  ;;  %v502_v5 = vand.u32 4294901760, %v1205_v29  ;;  %v1237_v46 = vand.u32 4294901760, %v30_v40 }
  0x33   :  { %400 = vmatpush.msrb.mxu2 %v1069_v61  ;;  %475 = vmatpush.msrb.mxu3 %v474_v44  ;;  %v497_v34 = vsub.f32 %v1187_v14, %v1438_v3  ;;  %v492_v44 = vand.u32 4294901760, %v491_v36  ;;  %v508_v7 = vand.u32 4294901760, %v1232_v48  ;;  %v514_v62 = vand.u32 4294901760, %v1245_v37 }
  0x34   :  { %316 = vmatpush.msrb.mxu0 %v1435_v9  ;;  %359 = vmatpush.msrb.mxu1 %v815_v10  ;;  %v486_v10 = vand.u32 4294901760, %v485_v4  ;;  %v80_v9 = vand.u32 4294901760, %v1216_v2  ;;  %v503_v4 = vsub.f32 %v1205_v29, %v502_v5  ;;  %v1441_v3 = vand.u32 4294901760, %v974_v26 }
  0x35   :  { %402 = vmatpush.msrb.mxu2 %v1084_v27  ;;  %481 = vmatpush.msrb.mxu3 %v480_v0  ;;  %v498_v53 = vand.u32 4294901760, %v497_v34 }
  0x36   :  { %320 = vmatpush.msrb.mxu0 %v1437_v13  ;;  %361 = vmatpush.msrb.mxu1 %v817_v11  ;;  %v13_v11 = vld [vmem:[%s1400_s0 + $0x8] sm:$0xff]  ;;  %v1440_v13 = vand.u32 4294901760, %v954_v1  ;;  %v81_v0 = vsub.f32 %v1216_v2, %v80_v9  ;;  %v509_v1 = vsub.f32 %v1232_v48, %v508_v7  ;;  %s773_s0 = smov [#allocation2]  }
  0x37   :  { %404 = vmatpush.msrb.mxu2 %v1111_v22  ;;  %487 = vmatpush.msrb.mxu3 %v486_v10  ;;  %v1267_v36 = vand.u32 4294901760, %v13_v11  ;;  %s735_s20 = sshll.u32 %s773_s0, 4  ;;  %s736_s20 = int_to_ptr.vmem [resolvable:$true] %s735_s20 }
  0x38   :  { %324 = vmatpush.msrb.mxu0 %v1439_v52  ;;  %363 = vmatpush.msrb.mxu1 %v836_v17  ;;  %v1262_v17 = vsub.f32 %v30_v40, %v1237_v46  ;;  %v1442_v40 = vand.u32 4294901760, %v991_v39  ;;  %v82_v26 = vand.u32 4294901760, %v81_v0  ;;  %v1443_v52 = vand.u32 4294901760, %v1007_v49 }
  0x39   :  { %406 = vmatpush.msrb.mxu2 %v1127_v60  ;;  %493 = vmatpush.msrb.mxu3 %v492_v44  ;;  %v1285_v34 = vsub.f32 %v13_v11, %v1267_v36  ;;  %v1444_v39 = vand.u32 4294901760, %v1014_v55 }
  0x3a   :  { %328 = vmatpush.msrb.mxu0 %v1440_v13  ;;  %365 = vmatpush.msrb.mxu1 %v855_v25  ;;  %v504_v25 = vand.u32 4294901760, %v503_v4  ;;  %v520_v10 = vand.u32 4294901760, %v1262_v17 }
  0x3b   :  { %408 = vmatpush.msrb.mxu2 %v1142_v16  ;;  %499 = vmatpush.msrb.mxu3 %v498_v53  ;;  %v421_v11 = vand.u32 4294901760, %v1285_v34 }
  0x3c   :  { %332 = vmatpush.msrb.mxu0 %v1441_v3  ;;  %367 = vmatpush.msrb.mxu1 %v862_v28  ;;  %v515_v28 = vsub.f32 %v1245_v37, %v514_v62  ;;  %v521_v44 = vsub.f32 %v1262_v17, %v520_v10 }
  0x3d   :  { %410 = vmatpush.msrb.mxu2 %v1157_v19  ;;  %505 = vmatpush.msrb.mxu3 %v504_v25 }
  0x3e   :  { %336 = vmatpush.msrb.mxu0 %v1442_v40  ;;  %369 = vmatpush.msrb.mxu1 %v883_v35  ;;  %v510_v35 = vand.u32 4294901760, %v509_v1  ;;  %v516_v49 = vand.u32 4294901760, %v515_v28 }
  0x3f   :  { %412 = vmatpush.msrb.mxu2 %v1173_v20  ;;  %83 = vmatmul.f32.vlgmr.msra.gmra.mxu0 %v82_v26 }
  0x40   :  { %340 = vmatpush.msrb.mxu0 %v1443_v52  ;;  %371 = vmatpush.msrb.mxu1 %v895_v41  ;;  %v522_v41 = vand.u32 4294901760, %v521_v44 }
  0x41   :  { %414 = vmatpush.msrb.mxu2 %v1202_v59  ;;  %511 = vmatpush.msrb.mxu3 %v510_v35 }
  0x42   :  { %344 = vmatpush.msrb.mxu0 %v1444_v39  ;;  %373 = vmatpush.msrb.mxu1 %v917_v50  ;;  %v422_v50 = vsub.f32 %v1285_v34, %v421_v11 }
  0x43   :  { %416 = vmatpush.msrb.mxu2 %v1218_v32  ;;  %517 = vmatpush.msrb.mxu3 %v516_v49 }
  0x44   :  { %531 = vmatpush.msra.mxu0 %v999_v43  ;;  %375 = vmatpush.msrb.mxu1 %v935_v57  ;;  %v1445_v57 = vand.u32 4294901760, %v999_v43  ;;  %v423_v55 = vand.u32 4294901760, %v422_v50  ;;  %v1447_v43 = vand.u32 4294901760, %v1041_v38 }
  0x45   :  { %238 = vmatmul.f32.vlgmr.msra.gmra.mxu2 %v1216_v2  ;;  %277 = vmatmul.f32.vlgmr.msra.gmra.mxu3 %v80_v9 }
  0x46   :  { %534 = vmatpush.msra.mxu0 %v1017_v56  ;;  %377 = vmatpush.msrb.mxu1 %v950_v63  ;;  %v1446_v63 = vand.u32 4294901760, %v1017_v56 }
  0x47   :  { %418 = vmatpush.msrb.mxu2 %v1237_v46  ;;  %523 = vmatpush.msrb.mxu3 %v522_v41 }
  0x48   :  { %537 = vmatpush.msra.mxu0 %v1041_v38  ;;  %379 = vmatpush.msrb.mxu1 %v971_v18  ;;  %v1448_v18 = vand.u32 4294901760, %v1057_v58 }
  0x49   :  { %625 = vmatpush.msra.mxu2 %v1445_v57  ;;  %184 = vmatmul.f32.vlgmr.msra.gmra.mxu1 %v1189_v21 }
  0x4a   :  { %540 = vmatpush.msra.mxu0 %v1057_v58  ;;  %692 = vmatpush.msra.mxu3 %v965_v8  ;;  %v1450_v58 = vand.u32 4294901760, %v1095_v24 }
  0x4b   :  { %629 = vmatpush.msra.mxu2 %v1446_v63  ;;  %381 = vmatpush.msrb.mxu1 %v978_v30  ;;  %v1452_v30 = vand.u32 4294901760, %v1117_v47 }
  0x4c   :  { %543 = vmatpush.msra.mxu0 %v1077_v33  ;;  %694 = vmatpush.msra.mxu3 %v980_v31 }
  0x4d   :  { %584 = vmatpush.msra.mxu1 %v965_v8  ;;  %633 = vmatpush.msra.mxu2 %v1447_v43  ;;  %v1449_v8 = vand.u32 4294901760, %v1077_v33  ;;  %v1451_v33 = vand.u32 4294901760, %v1101_v23 }
  0x4e   :  { %424 = vmatmul.f32.vlgmr.msrb.gmra.mxu2 %v423_v55  ;;  %546 = vmatpush.msra.mxu0 %v1095_v24  ;;  %v1453_v24 = vand.u32 4294901760, %v1140_v15 }
  0x4f   :  { %586 = vmatpush.msra.mxu1 %v980_v31  ;;  %637 = vmatpush.msra.mxu2 %v1448_v18 }
  0x50   :  { %696 = vmatpush.msra.mxu3 %v1009_v54  ;;  %346 = vmatmul.f32.vlgmr.msrb.gmra.mxu0 %v1189_v21 }
  0x51   :  { %525 = vmatmul.f32.vlgmr.msrb.gmra.mxu3 %v1267_v36  ;;  %549 = vmatpush.msra.mxu0 %v1101_v23  ;;  %v1454_v23 = vand.u32 4294901760, %v1155_v45 }
  0x52   :  { %588 = vmatpush.msra.mxu1 %v1009_v54  ;;  %641 = vmatpush.msra.mxu2 %v1449_v8 }
  0x53   :  { %698 = vmatpush.msra.mxu3 %v1027_v12  ;;  %383 = vmatmul.f32.vlgmr.msrb.gmra.mxu1 %v1189_v21 }
  0x54   :  { %552 = vmatpush.msra.mxu0 %v1117_v47  ;;  %590 = vmatpush.msra.mxu1 %v1027_v12 }
  0x55   :  { %645 = vmatpush.msra.mxu2 %v1450_v58  ;;  %700 = vmatpush.msra.mxu3 %v1043_v42 }
  0x56   :  { %555 = vmatpush.msra.mxu0 %v1140_v15  ;;  %592 = vmatpush.msra.mxu1 %v1043_v42 }
  0x57   :  { %649 = vmatpush.msra.mxu2 %v1451_v33  ;;  %702 = vmatpush.msra.mxu3 %v1059_v51 }
  0x58   :  { %558 = vmatpush.msra.mxu0 %v1155_v45  ;;  %594 = vmatpush.msra.mxu1 %v1059_v51  ;;  %v1455_v51 = vand.u32 4294901760, %v1171_v6 }
  0x59   :  { %653 = vmatpush.msra.mxu2 %v1452_v30  ;;  %704 = vmatpush.msra.mxu3 %v1069_v61 }
  0x5a   :  { %561 = vmatpush.msra.mxu0 %v1171_v6  ;;  %596 = vmatpush.msra.mxu1 %v1069_v61 }
  0x5b   :  { %657 = vmatpush.msra.mxu2 %v1453_v24  ;;  %706 = vmatpush.msra.mxu3 %v1084_v27 }
  0x5c   :  { %564 = vmatpush.msra.mxu0 %v1187_v14  ;;  %598 = vmatpush.msra.mxu1 %v1084_v27  ;;  %v1456_v27 = vand.u32 4294901760, %v1187_v14 }
  0x5d   :  { %661 = vmatpush.msra.mxu2 %v1454_v23  ;;  %708 = vmatpush.msra.mxu3 %v1111_v22 }
  0x5e   :  { %567 = vmatpush.msra.mxu0 %v1205_v29  ;;  %600 = vmatpush.msra.mxu1 %v1111_v22 }
  0x5f   :  { %665 = vmatpush.msra.mxu2 %v1455_v51  ;;  %710 = vmatpush.msra.mxu3 %v1127_v60 }
  0x60   :  { %570 = vmatpush.msra.mxu0 %v1232_v48  ;;  %602 = vmatpush.msra.mxu1 %v1127_v60 }
  0x61   :  { %669 = vmatpush.msra.mxu2 %v1456_v27  ;;  %712 = vmatpush.msra.mxu3 %v1142_v16 }
  0x62   :  { %573 = vmatpush.msra.mxu0 %v1245_v37  ;;  %604 = vmatpush.msra.mxu1 %v1142_v16 }
  0x63   :  { %673 = vmatpush.msra.mxu2 %v502_v5  ;;  %714 = vmatpush.msra.mxu3 %v1157_v19 }
  0x64   :  { %576 = vmatpush.msra.mxu0 %v1262_v17  ;;  %606 = vmatpush.msra.mxu1 %v1157_v19 }
  0x65   :  { %677 = vmatpush.msra.mxu2 %v508_v7  ;;  %716 = vmatpush.msra.mxu3 %v1173_v20 }
  0x66   :  { %579 = vmatmul.f32.vlgmr.msra.gmra.mxu0 %v1285_v34  ;;  %608 = vmatpush.msra.mxu1 %v1173_v20 }
  0x67   :  { %681 = vmatpush.msra.mxu2 %v514_v62  ;;  %718 = vmatpush.msra.mxu3 %v1202_v59 }
  0x68   :  { %610 = vmatpush.msra.mxu1 %v1202_v59 }
  0x69   :  { %685 = vmatpush.msra.mxu2 %v520_v10  ;;  %720 = vmatpush.msra.mxu3 %v1218_v32 }
  0x6a   :  { %687 = vmatmul.f32.vlgmr.msra.gmra.mxu2 %v1267_v36  ;;  %612 = vmatpush.msra.mxu1 %v1218_v32 }
  0x6b   :  { %722 = vmatpush.msra.mxu3 %v1237_v46 }
  0x6c   :  { %724 = vmatmul.f32.vlgmr.msra.gmra.mxu3 %v1267_v36  ;;  %614 = vmatpush.msra.mxu1 %v1237_v46 }
  0x6d   :  { %618 = vmatmul.f32.vlgmr.msra.gmra.mxu1 %v421_v11 }
  0xbc   :  { %v84_v38 = vpop.f32.mrf.mxu0 }
  0xc6   :  { %v185_v31 = vpop.f32.mrf.mxu1 }
  0xc7   :  { %v186_v54 = vadd.f32 %v185_v31, %v84_v38 }
  0xc8   :  { %v239_v56 = vpop.f32.mrf.mxu2  ;;  %v278_v42 = vpop.f32.mrf.mxu3 }
  0xc9   :  { %v240_v12 = vadd.f32 %v239_v56, %v186_v54 }
  0xcb   :  { %v279_v47 = vadd.f32 %v278_v42, %v240_v12 }
  0xcd   :  { %v347_v61 = vpop.f32.mrf.mxu0 }
  0xce   :  { %v348_v22 = vadd.f32 %v347_v61, %v279_v47 }
  0xd0   :  { %v384_v15 = vpop.f32.mrf.mxu1 }
  0xd1   :  { %v385_v60 = vadd.f32 %v384_v15, %v348_v22  ;;  %v425_v45 = vpop.f32.mrf.mxu2 }
  0xd3   :  { %v426_v16 = vadd.f32 %v425_v45, %v385_v60 }
  0xd4   :  { %v526_v6 = vpop.f32.mrf.mxu3 }
  0xd5   :  { %v527_v14 = vadd.f32 %v526_v6, %v426_v16 }
  0xe3   :  { %v580_v19 = vpop.f32.mrf.mxu0 }
  0xe4   :  { %v581_v20 = vadd.f32 %v580_v19, %v527_v14 }
  0xea   :  { %v619_v59 = vpop.f32.mrf.mxu1 }
  0xeb   :  { %v620_v21 = vadd.f32 %v619_v59, %v581_v20 }
  0xed   :  { %v688_v2 = vpop.f32.mrf.mxu2 }
  0xee   :  { %v689_v29 = vadd.f32 %v688_v2, %v620_v21 }
  0xef   :  { %v725_v32 = vpop.f32.mrf.mxu3 }
  0xf0   :  { %v726_v5 = vadd.f32 %v725_v32, %v689_v29 }
  0xf2   :  { %729 = vst.msk [vmem:[#allocation2] sm:$0xff] %vm728_vm0, %v726_v5 }
  0xf3   :  { %740 = dma.vmem_to_hbm [thread:$0]  %s736_s20, 128, %s738_s23, [#allocation3]  }
  0xf4   :  { %771 = dma.done.wait [#allocation3], 128  }
  0xf5   :  { %772 = vsyncadd [#allocation3], 4294967168 }
  0xf6   :  { %745 = vsyncpa [#allocation3], 1 }

</bundles_post_ra>
